<compile_context>
chip_gen: v7x
topology: tpu7x:2x2x1
jax: 0.10.0
libtpu: 0.0.40
codegen_flags: <defaults>
</compile_context>

<pallas_src>
import math

import jax
import jax.numpy as jnp
from jax.experimental import pallas as pl
from jax.experimental.pallas import tpu as pltpu


def _round_up(x, m):
    return (x + m - 1) // m * m


def _pad_to(x, shape):
    pads = [(0, t - s) for s, t in zip(x.shape, shape)]
    if any(p[1] for p in pads):
        x = jnp.pad(x, pads)
    return x


def gcn_mid_kernel(feature_ref, weight_ref, adj_ref, bias_ref, out_ref):
    # support = relu(feature @ weight) : MXU (bf16 x bf16 -> f32 acc) + VPU max
    support = jnp.maximum(
        jnp.dot(feature_ref[...], weight_ref[...],
                preferred_element_type=jnp.float32),
        0.0,
    )
    # (adj + I) @ support == adj @ support + support
    # Feed the second MXU pass in the operand dtype (bf16 on the fast path),
    # keep accumulation and the whole epilogue in f32.
    agg = jnp.dot(adj_ref[...], support.astype(adj_ref.dtype),
                  preferred_element_type=jnp.float32)
    # NOTE: output_mid = (adj@adj - I) @ support is dead code in the torch
    # forward() (never returned), so it is intentionally not computed here.
    out_ref[...] = (agg + support + bias_ref[...]).astype(out_ref.dtype)


def item_graph_convolution_mid(feature, adj, weight, bias, *,
                               operand_dtype=jnp.bfloat16):
    """Forward pass.

    feature: [N, F] or [B, N, F]
    adj:     [N, N] or [B, N, N]   (dense; torch.spmm == dense matmul)
    weight:  [F, E]
    bias:    [E]
    returns: [N, E] or [B, N, E] in float32
    """
    single = feature.ndim == 2
    if single:
        feature = feature[None]
        adj = adj[None]

    B, N, F = feature.shape
    E = weight.shape[1]

    # Pad sublane dim N to a multiple of 8 and lane dim E to a multiple of 128
    # (zero padding: padded support rows/cols are exactly zero, padded output
    # columns are bias-only and get sliced away).
    Np = _round_up(max(N, 8), 8)
    Ep = _round_up(max(E, 128), 128)

    feat_p = _pad_to(feature, (B, Np, F)).astype(operand_dtype)
    adj_p = _pad_to(adj, (B, Np, Np)).astype(operand_dtype)
    w_p = _pad_to(weight, (F, Ep)).astype(operand_dtype)
    b_p = _pad_to(bias.reshape(1, E), (1, Ep)).astype(jnp.float32)

    out = pl.pallas_call(
        gcn_mid_kernel,
        out_shape=jax.ShapeDtypeStruct((B, Np, Ep), jnp.float32),
        grid=(B,),
        in_specs=[
            # per-graph feature tile
            pl.BlockSpec((None, Np, F), lambda b: (b, 0, 0)),
            # weight: same block every step -> stays resident in VMEM
            pl.BlockSpec((F, Ep), lambda b: (0, 0)),
            # per-graph dense adjacency tile
            pl.BlockSpec((None, Np, Np), lambda b: (b, 0, 0)),
            # bias row: resident, broadcast over rows inside the kernel
            pl.BlockSpec((1, Ep), lambda b: (0, 0)),
        ],
        out_specs=pl.BlockSpec((None, Np, Ep), lambda b: (b, 0, 0)),
        compiler_params=pltpu.CompilerParams(
            dimension_semantics=("parallel",)),
    )(feat_p, w_p, adj_p, b_p)

    out = out[:, :N, :E]
    if single:
        out = out[0]
    return out


# ----------------------------- references -----------------------------------

def reference_f32(feature, adj, weight, bias):
    """Full-precision reference of the torch forward()."""
    support = jnp.maximum(
        jnp.einsum("bnf,fe->bne", feature, weight,
                   preferred_element_type=jnp.float32), 0.0)
    agg = jnp.einsum("bnm,bme->bne", adj, support,
                     preferred_element_type=jnp.float32)
    return agg + support + bias


def reference_cast(feature, adj, weight, bias, operand_dtype):
    """Reference with the same bf16-operand / f32-accumulate recipe as kernel."""
    f = feature.astype(operand_dtype)
    w = weight.astype(operand_dtype)
    a = adj.astype(operand_dtype)
    support = jnp.maximum(
        jnp.einsum("bnf,fe->bne", f, w,
                   preferred_element_type=jnp.float32), 0.0)
    agg = jnp.einsum("bnm,bme->bne", a, support.astype(operand_dtype),
                     preferred_element_type=jnp.float32)
    return agg + support + bias


if __name__ == "__main__":
    # Small, module-consistent shapes: B item graphs, N nodes, features F,
    # embedding E.
    B, N, F, E = 4, 32, 16, 64

    key = jax.random.PRNGKey(0)
    k_feat, k_adj, k_w, k_b = jax.random.split(key, 4)

    feature = jax.random.normal(k_feat, (B, N, F), dtype=jnp.float32)
    # Dense 0/1 adjacency (torch.spmm on a sparse adj is mathematically
    # identical to a dense matmul).
    adj = (jax.random.uniform(k_adj, (B, N, N)) > 0.7).astype(jnp.float32)

    # Parameter init matching reset_parameters(): U(-stdv, stdv), stdv=1/sqrt(E)
    stdv = 1.0 / math.sqrt(E)
    weight = jax.random.uniform(k_w, (F, E), minval=-stdv, maxval=stdv,
                                dtype=jnp.float32)
    bias = jax.random.uniform(k_b, (E,), minval=-stdv, maxval=stdv,
                              dtype=jnp.float32)
    # TODO(synk): self.nn_cat (Linear(2E, E)) is created in __init__ but never
    # used in forward(), so no parameters are materialized for it.

    # Batched path.
    out = jax.block_until_ready(
        item_graph_convolution_mid(feature, adj, weight, bias))
    assert out.shape == (B, N, E)

    ref_bf16 = reference_cast(feature, adj, weight, bias, jnp.bfloat16)
    ref_f32 = reference_f32(feature, adj, weight, bias)
    assert jnp.allclose(out, ref_bf16, atol=1e-3, rtol=1e-3), \
        "mismatch vs bf16-operand reference"
    assert jnp.allclose(out, ref_f32, atol=5e-2, rtol=5e-2), \
        "mismatch vs f32 reference"

    # Single-graph path (matches the original module signature).
    out1 = jax.block_until_ready(
        item_graph_convolution_mid(feature[0], adj[0], weight, bias))
    assert out1.shape == (N, E)
    assert jnp.allclose(out1, out[0], atol=1e-5, rtol=1e-5)

    print("KERNEL_OK")
</pallas_src>

<mosaic_0001>
module attributes {stable_mosaic.version = 11 : i64} {
  func.func @gcn_mid_kernel(%arg0: i32, %arg1: memref<1x32x16xbf16, #tpu.memory_space<vmem>>, %arg2: memref<16x128xbf16, #tpu.memory_space<vmem>>, %arg3: memref<1x32x32xbf16, #tpu.memory_space<vmem>>, %arg4: memref<1x128xf32, #tpu.memory_space<vmem>>, %arg5: memref<1x32x128xf32, #tpu.memory_space<vmem>>) attributes {dimension_semantics = [#tpu.dimension_semantics<parallel>], iteration_bounds = array<i64: 4>, scalar_prefetch = 0 : i64, scratch_operands = 0 : i64, tpu.core_type = #tpu.core_type<tc>, window_params = [{transform_indices = @transform_0, window_bounds = array<i64: 1, 32, 16>}, {pipeline_mode = #tpu.pipeline_mode<synchronous>, transform_indices = @transform_1, window_bounds = array<i64: 16, 128>}, {transform_indices = @transform_2, window_bounds = array<i64: 1, 32, 32>}, {pipeline_mode = #tpu.pipeline_mode<synchronous>, transform_indices = @transform_3, window_bounds = array<i64: 1, 128>}, {transform_indices = @transform_4, window_bounds = array<i64: 1, 32, 128>}]} {
    %c0 = arith.constant 0 : index
    %c0_0 = arith.constant 0 : index
    %c0_1 = arith.constant 0 : index
    %0 = vector.load %arg1[%c0, %c0_0, %c0_1] : memref<1x32x16xbf16, #tpu.memory_space<vmem>>, vector<1x32x16xbf16>
    %1 = vector.shape_cast %0 : vector<1x32x16xbf16> to vector<32x16xbf16>
    %c0_2 = arith.constant 0 : index
    %c0_3 = arith.constant 0 : index
    %2 = vector.load %arg2[%c0_2, %c0_3] : memref<16x128xbf16, #tpu.memory_space<vmem>>, vector<16x128xbf16>
    %cst = arith.constant dense<0.000000e+00> : vector<32x128xf32>
    %3 = tpu.matmul %1, %2, %cst {dimension_numbers = #tpu.dot_dimension_numbers<[1], [0], [0], [1], [0, 0, 1, 1], [], []>} : vector<32x16xbf16>, vector<16x128xbf16>, vector<32x128xf32> -> vector<32x128xf32>
    %cst_4 = arith.constant 0.000000e+00 : f32
    %4 = vector.broadcast %cst_4 : f32 to vector<32x128xf32>
    %5 = arith.maximumf %3, %4 : vector<32x128xf32>
    %c0_5 = arith.constant 0 : index
    %c0_6 = arith.constant 0 : index
    %c0_7 = arith.constant 0 : index
    %6 = vector.load %arg3[%c0_5, %c0_6, %c0_7] : memref<1x32x32xbf16, #tpu.memory_space<vmem>>, vector<1x32x32xbf16>
    %7 = vector.shape_cast %6 : vector<1x32x32xbf16> to vector<32x32xbf16>
    %8 = arith.truncf %5 : vector<32x128xf32> to vector<32x128xbf16>
    %cst_8 = arith.constant dense<0.000000e+00> : vector<32x128xf32>
    %9 = tpu.matmul %7, %8, %cst_8 {dimension_numbers = #tpu.dot_dimension_numbers<[1], [0], [0], [1], [0, 0, 1, 1], [], []>} : vector<32x32xbf16>, vector<32x128xbf16>, vector<32x128xf32> -> vector<32x128xf32>
    %10 = arith.addf %9, %5 : vector<32x128xf32>
    %c0_9 = arith.constant 0 : index
    %c0_10 = arith.constant 0 : index
    %11 = vector.load %arg4[%c0_9, %c0_10] : memref<1x128xf32, #tpu.memory_space<vmem>>, vector<1x128xf32>
    %12 = vector.broadcast %11 : vector<1x128xf32> to vector<32x128xf32>
    %13 = arith.addf %10, %12 : vector<32x128xf32>
    %c0_11 = arith.constant 0 : index
    %c0_12 = arith.constant 0 : index
    %c0_13 = arith.constant 0 : index
    %14 = vector.load %arg5[%c0_11, %c0_12, %c0_13] : memref<1x32x128xf32, #tpu.memory_space<vmem>>, vector<1x32x128xf32>
    %15 = vector.shape_cast %14 : vector<1x32x128xf32> to vector<32x128xf32>
    %16 = vector.shape_cast %13 : vector<32x128xf32> to vector<1x32x128xf32>
    tpu.vector_store %arg5[%c0_11, %c0_12, %c0_13], %16 {strides = array<i32>} : memref<1x32x128xf32, #tpu.memory_space<vmem>>, vector<1x32x128xf32>,
    return
  }
  func.func @transform_0(%arg0: i32) -> (i32, i32, i32) {
    %c0_i32 = arith.constant 0 : i32
    %c0_i32_0 = arith.constant 0 : i32
    %c0_i32_1 = arith.constant 0 : i32
    return %arg0, %c0_i32, %c0_i32_0 : i32, i32, i32
  }
  func.func @transform_1(%arg0: i32) -> (i32, i32) {
    %c0_i32 = arith.constant 0 : i32
    %c0_i32_0 = arith.constant 0 : i32
    %c0_i32_1 = arith.constant 0 : i32
    return %c0_i32, %c0_i32_0 : i32, i32
  }
  func.func @transform_2(%arg0: i32) -> (i32, i32, i32) {
    %c0_i32 = arith.constant 0 : i32
    %c0_i32_0 = arith.constant 0 : i32
    %c0_i32_1 = arith.constant 0 : i32
    return %arg0, %c0_i32, %c0_i32_0 : i32, i32, i32
  }
  func.func @transform_3(%arg0: i32) -> (i32, i32) {
    %c0_i32 = arith.constant 0 : i32
    %c0_i32_0 = arith.constant 0 : i32
    %c0_i32_1 = arith.constant 0 : i32
    return %c0_i32, %c0_i32_0 : i32, i32
  }
  func.func @transform_4(%arg0: i32) -> (i32, i32, i32) {
    %c0_i32 = arith.constant 0 : i32
    %c0_i32_0 = arith.constant 0 : i32
    %c0_i32_1 = arith.constant 0 : i32
    return %arg0, %c0_i32, %c0_i32_0 : i32, i32, i32
  }
}

</mosaic_0001>

<bundles_post_ra>
// kernel: tpu_custom_call.1
= control target key start
LH: loop header
LB: loop body
LE: loop exit
PB: predicated region body
PF: predicated region fallthrough
CT: control target
= control target key end

     0   :  { %9 = vsyncpa [#allocation3], 0  ;;  %s774_s0 = inlined_call_operand.vmem [shape: bf16[4,32,16], index: 0, kind: input, shape index: {}]   ;;  %s775_s1 = inlined_call_operand.vmem [shape: bf16[16,128], index: 1, kind: input, shape index: {}]   ;;  %s776_s2 = inlined_call_operand.vmem [shape: bf16[4,32,32], index: 2, kind: input, shape index: {}]   ;;  %s777_s3 = inlined_call_operand.vmem [shape: f32[1,128], index: 3, kind: input, shape index: {}]   ;;  %s778_s4 = inlined_call_operand.hbm [shape: f32[4,32,128], index: 4, kind: output, shape index: {}]  }
   0x1   :  { %11 = vsyncpa [#allocation3 + $0x1], 0  ;;  %s660_s15 = smov 0   ;;  %s662_s16 = smov 0  }
   0x2   :  { %s664_s17 = smov 0   ;;  %s666_s18 = smov 0  }
   0x3 LB: > { %s681_s19 = sadd.s32 4294967295, %s630_s18   ;;  %s474_s20 = sadd.s32 4294967294, %s630_s18   ;;  %s630_s18 = sphi %s666_s18, %s784_s18   ;;  %s626_s17 = sphi %s664_s17, %s783_s17   ;;  %s622_s16 = sphi %s662_s16, %s782_s16   ;;  %s618_s15 = sphi %s660_s15, %s781_s15  }
   0x4   : > { %s685_s21 = sadd.s32 1, %s630_s18   ;;  %s118_s22 = sadd.s32 1, %s626_s17 }
   0x5   : > { %s115_s23 = ssub.s32 %s630_s18, %s685_s21  ;;  %p128_p0 = scmp.ne.s32.totalorder %s626_s17, %s622_s16 }
   0x6   : > { %p116_p1 = scmp.eq.s32.totalorder %s115_s23, 0  ;;  %p129_p2 = scmp.eq.s32.totalorder %s681_s19, 3 }
   0x7   : > { %p134_p3 = scmp.ne.s32.totalorder %s622_s16, %s618_s15  ;;  %p135_p4 = scmp.eq.s32.totalorder %s474_s20, 3 }
   0x8   : > { %s696_s24 = scalar_select %p116_p1, %s626_s17, %s118_s22  }
   0x9   : > { %p698_p5 = por %p129_p2, %p128_p0  ;;  %p702_p6 = por %p135_p4, %p134_p3 }
   0xa   : > { %p477_p7 = scmp.ge.s32.totalorder %s630_s18, 1  ;;  %p175_p8 = scmp.lt.s32.totalorder %s630_s18, 5 }
   0xc   : > { %p176_p9 = pnand %p477_p7, %p175_p8 }
   0xd   : > { %v563_v0 = vld [vmem:[%s775_s1] sm:$0xff] (!%p176_p9)   ;;  %p206_p10 = scmp.lt.s32.totalorder (!%p176_p9), %s681_s19, 3  ;;  %vm239_vm0 = vcmask (!%p176_p9), 130048   ;;  %vm315_vm1 = vcmask (!%p176_p9), 261120   ;;  %s203_s11 = sand.u32 (!%p176_p9), 1, %s622_s16  }
   0xe   : > { %179 = sbr.rel (%p176_p9) target bundleno = 488 (0x1e8), region = 36  ;;  %508 = vmatprep.subr.bf16.mxu0 (!%p176_p9), %v563_v0  ;;  %s478_s12 = sshll.u32 (!%p176_p9), %s203_s11, 5  ;;  %v492_v16 = vld [vmem:[%s777_s3] ss:$0 sm:$0xff] (!%p176_p9) }
   0xf   : > { %509 = vmatpush3.bf16.msra.mxu0 (!%p176_p9), %v563_v0  ;;  %s205_s20 = scalar_lea.vmem (!%p176_p9), [#allocation2], %s478_s12  ;;  %s500_s23 = sshll.u32 (!%p176_p9), %s681_s19, 9 }
  0x10   : > { %s400_s22 = sshll.u32 (!%p176_p9), %s205_s20, 4  ;;  %s632_s5 = smov (!%p176_p9), [#allocation2]   ;;  %s726_s22 = int_to_ptr.vmem [resolvable:$true] %s400_s22 }
  0x11   : > { %s572_s6 = sshll.u32 (!%p176_p9), %s632_s5, 4  ;;  %s573_s6 = int_to_ptr.vmem [resolvable:$false] %s572_s6 }
  0x12   : > { %p575_p0 = scmp.lt.s32.totalorder (!%p176_p9), %s726_s22, %s573_s6 }
  0x15   : > { %s207_s29 = scalar_select %p206_p10, %s681_s19, 3 }
  0x16   : > { %s733_s19 = scalar_lea.sflag [#allocation3], %s203_s11 }
  0x17   : > { %s498_s30 = sshll.u32 %s207_s29, 4  ;;  %s731_s29 = scalar_lea.hbm %s778_s4, %s500_s23 }
  0x18   : > { %s210_s7 = scalar_lea.vmem %s774_s0, %s498_s30  ;;  %s215_s10 = scalar_lea.vmem %s776_s2, %s498_s30 }
  0x19   : > { %v564_v1 = vld [vmem:[%s210_s7] sm:$0xff]   ;;  %v565_v2 = vld [vmem:[%s210_s7 + $0x8] sm:$0xff]   ;;  %s568_s30 = scalar_lea.vmem %s726_s22, 512  ;;  %s574_s7 = scalar_lea.vmem %s573_s6, 1024 }
  0x1a   : > { %510 = vmatprep.mubr.msk.bf16.mxu0 %vm239_vm0, %v564_v1  ;;  %v566_v3 = vld [vmem:[%s215_s10] sm:$0xff]   ;;  %v567_v14 = vld [vmem:[%s215_s10 + $0x8] sm:$0xff]   ;;  %p569_p11 = scmp.ne.s32.totalorder %s726_s22, %s568_s30  ;;  %p576_p1 = scmp.lt.s32.totalorder %s574_s7, %s568_s30 }
  0x1b   : > { %511 = vmatmul.mubr.msk.bf16.vlgmr.msra.gmra.mrb[0].mxu0 %vm239_vm0, %v565_v2  ;;  %518 = vmatprep.mubr.msk.bf16.mxu1 %vm315_vm1, %v566_v3 }
  0x1c   : > { %p570_p12 = pnand %p569_p11, %p698_p5  ;;  %p577_p2 = por %p576_p1, %p575_p0 }
  0x1e   : > { %p571_p13 = pneg %p570_p12 }
  0x20   : > { %p578_p3 = pnand %p577_p2, %p571_p13 }
  0xee   : > { %v512_v4 = vpop.f32.mrb[0].mxu0 }
  0xef   : > { %v280_v5 = vpop.f32.mrb[1].mxu0  ;;  %v297_v11 = vmax.f32 %v512_v4, 0.0 }
  0xf0   : > { %v513_v6 = vpop.f32.mrb[2].mxu0  ;;  %v295_v8 = vmax.f32 %v280_v5, 0.0 }
  0xf1   : > { %v283_v7 = vpop.f32.mrb[3].mxu0  ;;  %v298_v9 = vmax.f32 %v513_v6, 0.0 }
  0xf2   : > { %v296_v10 = vmax.f32 %v283_v7, 0.0 }
  0xf3   : > { %v304_v13 = vpack.c.bf16 %v298_v9, %v297_v11 }
  0xf4   : > { %v303_v12 = vpack.c.bf16 %v296_v10, %v295_v8 }
  0xf6   : > { %514 = vmatprep.subr.bf16.mxu1 %v303_v12 }
  0xf7   : > { %515 = vmatpush3.bf16.msra.mxu1 %v303_v12 }
  0xf8   : > { %516 = vmatprep.subr.bf16.mxu1 %v304_v13 }
  0xfb   : > { %517 = vmatpush3.bf16.msra.mxu1 %v304_v13 }
  0xfe   : > { %519 = vmatmul.mubr.msk.bf16.vlgmr.msra.gmra.mrb[0].mxu1 %vm315_vm1, %v567_v14 }
 0x1d1   : > { %v520_v15 = vpop.f32.mrb[0].mxu1 }
 0x1d2   : > { %v365_v17 = vadd.f32 %v520_v15, %v297_v11  ;;  %v356_v18 = vpop.f32.mrb[1].mxu1 }
 0x1d3   : > { %v357_v19 = vadd.f32 %v356_v18, %v295_v8  ;;  %v521_v20 = vpop.f32.mrb[2].mxu1 }
 0x1d4   : > { %v380_v21 = vadd.f32 %v492_v16, %v365_v17  ;;  %v368_v22 = vadd.f32 %v521_v20, %v298_v9  ;;  %v359_v23 = vpop.f32.mrb[3].mxu1 }
 0x1d5   : > { %v378_v24 = vadd.f32 %v492_v16, %v357_v19  ;;  %v360_v25 = vadd.f32 %v359_v23, %v296_v10 }
 0x1d6   : > { %384 = vst [vmem:[%s205_s20 + $0x10] sm:$0xff] %v380_v21  ;;  %v381_v26 = vadd.f32 %v492_v16, %v368_v22 }
 0x1d7   : > { %382 = vst [vmem:[%s205_s20] sm:$0xff] %v378_v24  ;;  %v379_v27 = vadd.f32 %v492_v16, %v360_v25 }
 0x1d8   : > { %385 = vst [vmem:[%s205_s20 + $0x18] sm:$0xff] %v381_v26 }
 0x1d9   : > { %383 = vst [vmem:[%s205_s20 + $0x8] sm:$0xff] %v379_v27 }
 0x1da   : > { %581 = shalt.err (!%p578_p3)
}
 0x1db   : > { %s582_s8 = scalar_lea.hbm %s731_s29, 512  ;;  %s586_s11 = scalar_lea.hbm %s778_s4, 2048 }
 0x1dc   : > { %p583_p4 = scmp.ne.s32.totalorder %s731_s29, %s582_s8  ;;  %p587_p9 = scmp.lt.u32.totalorder %s731_s29, %s778_s4 }
 0x1dd   : > { %p588_p10 = scmp.lt.u32.totalorder %s586_s11, %s582_s8  ;;  %p590_p12 = scmp.lt.u32.totalorder %s582_s8, %s731_s29 }
 0x1de   : > { %p584_p7 = pnand %p583_p4, %p698_p5 }
 0x1df   : > { %p589_p11 = por %p588_p10, %p587_p9 }
 0x1e0   : > { %p585_p8 = pneg %p584_p7 }
 0x1e1   : > { %p591_p13 = por %p590_p12, %p589_p11 }
 0x1e3   : > { %p592_p0 = pnand %p591_p13, %p585_p8 }
 0x1e5   : > { %595 = shalt.err (!%p592_p0)
}
 0x1e6   : > { %s633_s14 = smov 128   ;;  %s634_s20 = smov 8  }
 0x1e7   : > { %522 = dma.vmem_to_hbm [thread:$0]  (%p698_p5), %s726_s22, 512, %s731_s29, %s733_s19, %s633_s14, %s633_s14, %s634_s20  }
 0x1e8 PF: > { %p528_p1 = scmp.ge.s32.totalorder %s630_s18, 2  ;;  %s415_s23 = sand.u32 1, %s618_s15  }
 0x1e9   : > { %s416_s27 = scalar_lea.sflag [#allocation3], %s415_s23 }
 0x1ea   : > { %p525_p2 = pnand %p528_p1, %p702_p6 }
 0x1ec   : > { %613 = dma.done.wait (!%p525_p2), %s416_s27, 512  }
 0x1ed   : > { %615 = vsyncadd (!%p525_p2), %s416_s27, 4294966784  ;;  %p14_p3 = scmp.ge.s32.totalorder %s685_s21, 6   ;;  %s781_s15 = smov %s622_s16 }
 0x1ee   : > { %s782_s16 = smov %s626_s17  ;;  %s783_s17 = smov %s696_s24 }
 0x1ef   : > { %s784_s18 = smov %s685_s21  ;;  %16 = sbr.rel (!%p14_p3) target bundleno = 3 (0x3), region = 74 }
 0x1f6   :  { %421 = vsyncpa [#allocation3], 1 }
 0x1f7   :  { %423 = vsyncpa [#allocation3 + $0x1], 1 }

</bundles_post_ra>
